<compile_context>
chip_gen: v6e
topology: v6e:2x2x1
jax: 0.10.0
libtpu: 0.0.40
codegen_flags: <defaults>
</compile_context>

<pallas_src>
import jax
import jax.numpy as jnp
from jax import lax
from jax.experimental import pallas as pl
from jax.experimental.pallas import tpu as pltpu

# ------------------------------ configuration --------------------------------
B = 2                # batch
H = W = 16           # spatial
CIN = 1              # input channels
CH = 16              # stem_ch
EPS = 1e-6           # matches nn.BatchNorm2d(stem_ch, eps=1e-06)

HP, WP = H + 2, W + 2                 # spatial grid padded by 1 (conv padding) per side
LP = HP * WP                          # flattened padded spatial size (= 324)
LPAD = ((LP + 127) // 128) * 128      # lane-padded to a multiple of 128 (= 384)
K2 = 9 * CH                           # conv2 im2col contraction depth (= 144)

# flat-index shift of conv tap (kh, kw): tap value for output lane l is x_flat[l + s]
SHIFTS = tuple((kh - 1) * WP + (kw - 1) for kh in range(3) for kw in range(3))
# equivalent non-negative lane-roll amounts (pltpu.roll follows jnp.roll semantics)
ROLLS = tuple((-s) % LPAD for s in SHIFTS)


def _tap(arr, t):
    """Lane-roll `arr` so lane l holds arr[l + SHIFTS[t]] (valid lanes only)."""
    r = ROLLS[t]
    return arr if r == 0 else pltpu.roll(arr, r, axis=1)


# --------------------------------- kernel ------------------------------------
def stem_kernel(x_ref,            # (1, 1, LPAD) flattened zero-padded input (this batch)
                mask_ref,         # (1, LPAD)    1.0 on the valid HxW interior, else 0
                w1_ref,           # (CH, 9)      conv1 weights, tap-minor
                s1_ref, b1_ref,   # (CH, 1)      folded BN1 scale / (conv-bias+BN1) shift
                w2_ref,           # (CH, 9*CH)   conv2 weights, (tap, cin)-minor
                s2_ref, b2_ref,   # (CH, 1)
                o_ref,            # (CH, LPAD)   this batch's output, channel-major
                col_ref):         # scratch (9*CH, LPAD) conv2 im2col buffer
    x = x_ref[0]                                    # (1, LPAD)
    mask = mask_ref[...]
    w1 = w1_ref[...]

    # ---- conv1 (Cin = 1): 9 lane-rolled taps, broadcast FMA on the VPU ----
    acc1 = jnp.zeros((CH, LPAD), jnp.float32)
    for t in range(9):
        acc1 = acc1 + w1[:, t:t + 1] * _tap(x, t)   # (CH,1)*(1,LPAD) -> (CH,LPAD)
    # folded BN1 + ReLU, then re-zero the pad ring so conv2 sees correct padding
    h1 = jnp.maximum(acc1 * s1_ref[...] + b1_ref[...], 0.0) * mask

    # ---- conv2: stack the 9 rolled taps into an im2col buffer, one MXU matmul ----
    for t in range(9):
        col_ref[t * CH:(t + 1) * CH, :] = _tap(h1, t)        # aligned sublane writes
    acc2 = jnp.dot(w2_ref[...], col_ref[...],
                   preferred_element_type=jnp.float32)        # (CH,144)x(144,LPAD)
    o_ref[...] = jnp.maximum(acc2 * s2_ref[...] + b2_ref[...], 0.0)


# --------------------------------- wrapper ------------------------------------
def stem_block(x, params):
    """x: (B, 1, H, W) float32 (NCHW, same as the PyTorch module)."""
    assert x.shape == (B, CIN, H, W)

    # ---- layout plumbing & one-time parameter folding (tiny XLA ops) ----
    xp = jnp.pad(x[:, 0, :, :], ((0, 0), (1, 1), (1, 1)))            # (B, HP, WP)
    xflat = jnp.pad(xp.reshape(B, LP), ((0, 0), (0, LPAD - LP)))      # (B, LPAD)
    x3 = xflat.reshape(B, 1, LPAD)

    mask = jnp.pad(jnp.ones((H, W), jnp.float32), ((1, 1), (1, 1))).reshape(1, LP)
    mask = jnp.pad(mask, ((0, 0), (0, LPAD - LP)))                    # (1, LPAD)

    # conv1: (CH, 1, 3, 3) -> (CH, 9) with tap index t = kh*3 + kw
    w1 = params["conv1_w"].reshape(CH, 9)
    # conv2: (CO, CI, 3, 3) -> (CO, 9*CI) with column index t*CH + ci
    w2 = jnp.transpose(params["conv2_w"], (0, 2, 3, 1)).reshape(CH, K2)

    def fold(bias, gamma, beta, mean, var):
        scale = gamma / jnp.sqrt(var + EPS)
        shift = (bias - mean) * scale + beta
        return scale.reshape(CH, 1), shift.reshape(CH, 1)

    s1, b1 = fold(params["conv1_b"], params["bn1_g"], params["bn1_b"],
                  params["bn1_m"], params["bn1_v"])
    s2, b2 = fold(params["conv2_b"], params["bn2_g"], params["bn2_b"],
                  params["bn2_m"], params["bn2_v"])

    flops = 2 * B * H * W * 9 * CH * (CIN + CH)
    bytes_accessed = 4 * (B * LPAD + LPAD + 9 * CH + K2 * CH + 6 * CH + B * CH * LPAD)

    out_flat = pl.pallas_call(
        stem_kernel,
        out_shape=jax.ShapeDtypeStruct((B * CH, LPAD), jnp.float32),
        grid_spec=pltpu.PrefetchScalarGridSpec(
            num_scalar_prefetch=0,
            grid=(B,),
            in_specs=[
                pl.BlockSpec((1, 1, LPAD), lambda b: (b, 0, 0)),   # x (this batch)
                pl.BlockSpec((1, LPAD),   lambda b: (0, 0)),       # mask (shared)
                pl.BlockSpec((CH, 9),     lambda b: (0, 0)),       # w1
                pl.BlockSpec((CH, 1),     lambda b: (0, 0)),       # s1
                pl.BlockSpec((CH, 1),     lambda b: (0, 0)),       # b1
                pl.BlockSpec((CH, K2),    lambda b: (0, 0)),       # w2
                pl.BlockSpec((CH, 1),     lambda b: (0, 0)),       # s2
                pl.BlockSpec((CH, 1),     lambda b: (0, 0)),       # b2
            ],
            out_specs=pl.BlockSpec((CH, LPAD), lambda b: (b, 0)),
            scratch_shapes=[pltpu.VMEM((K2, LPAD), jnp.float32)],
        ),
        compiler_params=pltpu.CompilerParams(dimension_semantics=("parallel",)),
        cost_estimate=pl.CostEstimate(flops=flops, transcendentals=0,
                                      bytes_accessed=bytes_accessed),
    )(x3, mask, w1, s1, b1, w2, s2, b2)

    # (B*CH, LPAD) channel-major -> drop lane padding -> drop pad ring.  No transpose.
    out = (out_flat.reshape(B, CH, LPAD)[:, :, :LP]
           .reshape(B, CH, HP, WP)[:, :, 1:1 + H, 1:1 + W])
    return out


# ----------------------------- pure-JAX reference ------------------------------
def stem_block_ref(x, p):
    def conv_bn_relu(t, w, b, g, beta, m, v):
        y = lax.conv_general_dilated(t, w, (1, 1), ((1, 1), (1, 1)),
                                     dimension_numbers=("NCHW", "OIHW", "NCHW"))
        y = y + b[None, :, None, None]
        y = (y - m[None, :, None, None]) / jnp.sqrt(v + EPS)[None, :, None, None] \
            * g[None, :, None, None] + beta[None, :, None, None]
        return jnp.maximum(y, 0.0)

    y = conv_bn_relu(x, p["conv1_w"], p["conv1_b"], p["bn1_g"], p["bn1_b"],
                     p["bn1_m"], p["bn1_v"])
    y = conv_bn_relu(y, p["conv2_w"], p["conv2_b"], p["bn2_g"], p["bn2_b"],
                     p["bn2_m"], p["bn2_v"])
    return y


# ----------------------------------- main --------------------------------------
if __name__ == "__main__":
    key = jax.random.PRNGKey(0)
    ks = jax.random.split(key, 13)

    x = jax.random.normal(ks[0], (B, CIN, H, W), dtype=jnp.float32)

    params = {
        "conv1_w": 0.3 * jax.random.normal(ks[1], (CH, CIN, 3, 3), jnp.float32),
        "conv1_b": 0.1 * jax.random.normal(ks[2], (CH,), jnp.float32),
        "bn1_g": 1.0 + 0.1 * jax.random.normal(ks[3], (CH,), jnp.float32),
        "bn1_b": 0.1 * jax.random.normal(ks[4], (CH,), jnp.float32),
        "bn1_m": 0.1 * jax.random.normal(ks[5], (CH,), jnp.float32),
        "bn1_v": 1.0 + 0.5 * jax.random.uniform(ks[6], (CH,), jnp.float32),
        "conv2_w": 0.1 * jax.random.normal(ks[7], (CH, CH, 3, 3), jnp.float32),
        "conv2_b": 0.1 * jax.random.normal(ks[8], (CH,), jnp.float32),
        "bn2_g": 1.0 + 0.1 * jax.random.normal(ks[9], (CH,), jnp.float32),
        "bn2_b": 0.1 * jax.random.normal(ks[10], (CH,), jnp.float32),
        "bn2_m": 0.1 * jax.random.normal(ks[11], (CH,), jnp.float32),
        "bn2_v": 1.0 + 0.5 * jax.random.uniform(ks[12], (CH,), jnp.float32),
    }

    stem_fn = jax.jit(stem_block)
    out = jax.block_until_ready(stem_fn(x, params))
    ref = stem_block_ref(x, params)

    assert out.shape == (B, CH, H, W)
    err = jnp.max(jnp.abs(out - ref))
    assert jnp.allclose(out, ref, atol=1e-4, rtol=1e-4), f"max abs err = {err}"

    print("KERNEL_OK")
</pallas_src>

<mosaic_0001>
module attributes {stable_mosaic.version = 11 : i64} {
  func.func @stem_kernel(%arg0: i32, %arg1: memref<1x1x384xf32, #tpu.memory_space<vmem>>, %arg2: memref<1x384xf32, #tpu.memory_space<vmem>>, %arg3: memref<16x9xf32, #tpu.memory_space<vmem>>, %arg4: memref<16x1xf32, #tpu.memory_space<vmem>>, %arg5: memref<16x1xf32, #tpu.memory_space<vmem>>, %arg6: memref<16x144xf32, #tpu.memory_space<vmem>>, %arg7: memref<16x1xf32, #tpu.memory_space<vmem>>, %arg8: memref<16x1xf32, #tpu.memory_space<vmem>>, %arg9: memref<16x384xf32, #tpu.memory_space<vmem>>, %arg10: memref<144x384xf32, #tpu.memory_space<vmem>>) attributes {dimension_semantics = [#tpu.dimension_semantics<parallel>], iteration_bounds = array<i64: 2>, scalar_prefetch = 0 : i64, scratch_operands = 1 : i64, tpu.core_type = #tpu.core_type<tc>, window_params = [{transform_indices = @transform_0, window_bounds = array<i64: 1, 1, 384>}, {pipeline_mode = #tpu.pipeline_mode<synchronous>, transform_indices = @transform_1, window_bounds = array<i64: 1, 384>}, {pipeline_mode = #tpu.pipeline_mode<synchronous>, transform_indices = @transform_2, window_bounds = array<i64: 16, 9>}, {pipeline_mode = #tpu.pipeline_mode<synchronous>, transform_indices = @transform_3, window_bounds = array<i64: 16, 1>}, {pipeline_mode = #tpu.pipeline_mode<synchronous>, transform_indices = @transform_4, window_bounds = array<i64: 16, 1>}, {pipeline_mode = #tpu.pipeline_mode<synchronous>, transform_indices = @transform_5, window_bounds = array<i64: 16, 144>}, {pipeline_mode = #tpu.pipeline_mode<synchronous>, transform_indices = @transform_6, window_bounds = array<i64: 16, 1>}, {pipeline_mode = #tpu.pipeline_mode<synchronous>, transform_indices = @transform_7, window_bounds = array<i64: 16, 1>}, {transform_indices = @transform_8, window_bounds = array<i64: 16, 384>}]} {
    %c0 = arith.constant 0 : index
    %c0_0 = arith.constant 0 : index
    %c0_1 = arith.constant 0 : index
    %0 = vector.load %arg1[%c0, %c0_0, %c0_1] : memref<1x1x384xf32, #tpu.memory_space<vmem>>, vector<1x1x384xf32>
    %1 = vector.shape_cast %0 : vector<1x1x384xf32> to vector<1x384xf32>
    %c0_2 = arith.constant 0 : index
    %c0_3 = arith.constant 0 : index
    %2 = vector.load %arg2[%c0_2, %c0_3] : memref<1x384xf32, #tpu.memory_space<vmem>>, vector<1x384xf32>
    %c0_4 = arith.constant 0 : index
    %c0_5 = arith.constant 0 : index
    %3 = vector.load %arg3[%c0_4, %c0_5] : memref<16x9xf32, #tpu.memory_space<vmem>>, vector<16x9xf32>
    %cst = arith.constant 0.000000e+00 : f32
    %4 = vector.broadcast %cst : f32 to vector<16x384xf32>
    %5 = vector.extract_strided_slice %3 {offsets = [0, 0], sizes = [16, 1], strides = [1, 1]} : vector<16x9xf32> to vector<16x1xf32>
    %c19_i32 = arith.constant 19 : i32
    %6 = tpu.dynamic_rotate %1 by %c19_i32 dim 1 : vector<1x384xf32>, i32 -> vector<1x384xf32>
    %7 = vector.broadcast %5 : vector<16x1xf32> to vector<16x384xf32>
    %8 = vector.broadcast %6 : vector<1x384xf32> to vector<16x384xf32>
    %9 = arith.mulf %7, %8 : vector<16x384xf32>
    %10 = arith.addf %4, %9 : vector<16x384xf32>
    %11 = vector.extract_strided_slice %3 {offsets = [0, 1], sizes = [16, 1], strides = [1, 1]} : vector<16x9xf32> to vector<16x1xf32>
    %c18_i32 = arith.constant 18 : i32
    %12 = tpu.dynamic_rotate %1 by %c18_i32 dim 1 : vector<1x384xf32>, i32 -> vector<1x384xf32>
    %13 = vector.broadcast %11 : vector<16x1xf32> to vector<16x384xf32>
    %14 = vector.broadcast %12 : vector<1x384xf32> to vector<16x384xf32>
    %15 = arith.mulf %13, %14 : vector<16x384xf32>
    %16 = arith.addf %10, %15 : vector<16x384xf32>
    %17 = vector.extract_strided_slice %3 {offsets = [0, 2], sizes = [16, 1], strides = [1, 1]} : vector<16x9xf32> to vector<16x1xf32>
    %c17_i32 = arith.constant 17 : i32
    %18 = tpu.dynamic_rotate %1 by %c17_i32 dim 1 : vector<1x384xf32>, i32 -> vector<1x384xf32>
    %19 = vector.broadcast %17 : vector<16x1xf32> to vector<16x384xf32>
    %20 = vector.broadcast %18 : vector<1x384xf32> to vector<16x384xf32>
    %21 = arith.mulf %19, %20 : vector<16x384xf32>
    %22 = arith.addf %16, %21 : vector<16x384xf32>
    %23 = vector.extract_strided_slice %3 {offsets = [0, 3], sizes = [16, 1], strides = [1, 1]} : vector<16x9xf32> to vector<16x1xf32>
    %c1_i32 = arith.constant 1 : i32
    %24 = tpu.dynamic_rotate %1 by %c1_i32 dim 1 : vector<1x384xf32>, i32 -> vector<1x384xf32>
    %25 = vector.broadcast %23 : vector<16x1xf32> to vector<16x384xf32>
    %26 = vector.broadcast %24 : vector<1x384xf32> to vector<16x384xf32>
    %27 = arith.mulf %25, %26 : vector<16x384xf32>
    %28 = arith.addf %22, %27 : vector<16x384xf32>
    %29 = vector.extract_strided_slice %3 {offsets = [0, 4], sizes = [16, 1], strides = [1, 1]} : vector<16x9xf32> to vector<16x1xf32>
    %30 = vector.broadcast %29 : vector<16x1xf32> to vector<16x384xf32>
    %31 = vector.broadcast %1 : vector<1x384xf32> to vector<16x384xf32>
    %32 = arith.mulf %30, %31 : vector<16x384xf32>
    %33 = arith.addf %28, %32 : vector<16x384xf32>
    %34 = vector.extract_strided_slice %3 {offsets = [0, 5], sizes = [16, 1], strides = [1, 1]} : vector<16x9xf32> to vector<16x1xf32>
    %c383_i32 = arith.constant 383 : i32
    %35 = tpu.dynamic_rotate %1 by %c383_i32 dim 1 : vector<1x384xf32>, i32 -> vector<1x384xf32>
    %36 = vector.broadcast %34 : vector<16x1xf32> to vector<16x384xf32>
    %37 = vector.broadcast %35 : vector<1x384xf32> to vector<16x384xf32>
    %38 = arith.mulf %36, %37 : vector<16x384xf32>
    %39 = arith.addf %33, %38 : vector<16x384xf32>
    %40 = vector.extract_strided_slice %3 {offsets = [0, 6], sizes = [16, 1], strides = [1, 1]} : vector<16x9xf32> to vector<16x1xf32>
    %c367_i32 = arith.constant 367 : i32
    %41 = tpu.dynamic_rotate %1 by %c367_i32 dim 1 : vector<1x384xf32>, i32 -> vector<1x384xf32>
    %42 = vector.broadcast %40 : vector<16x1xf32> to vector<16x384xf32>
    %43 = vector.broadcast %41 : vector<1x384xf32> to vector<16x384xf32>
    %44 = arith.mulf %42, %43 : vector<16x384xf32>
    %45 = arith.addf %39, %44 : vector<16x384xf32>
    %46 = vector.extract_strided_slice %3 {offsets = [0, 7], sizes = [16, 1], strides = [1, 1]} : vector<16x9xf32> to vector<16x1xf32>
    %c366_i32 = arith.constant 366 : i32
    %47 = tpu.dynamic_rotate %1 by %c366_i32 dim 1 : vector<1x384xf32>, i32 -> vector<1x384xf32>
    %48 = vector.broadcast %46 : vector<16x1xf32> to vector<16x384xf32>
    %49 = vector.broadcast %47 : vector<1x384xf32> to vector<16x384xf32>
    %50 = arith.mulf %48, %49 : vector<16x384xf32>
    %51 = arith.addf %45, %50 : vector<16x384xf32>
    %52 = vector.extract_strided_slice %3 {offsets = [0, 8], sizes = [16, 1], strides = [1, 1]} : vector<16x9xf32> to vector<16x1xf32>
    %c365_i32 = arith.constant 365 : i32
    %53 = tpu.dynamic_rotate %1 by %c365_i32 dim 1 : vector<1x384xf32>, i32 -> vector<1x384xf32>
    %54 = vector.broadcast %52 : vector<16x1xf32> to vector<16x384xf32>
    %55 = vector.broadcast %53 : vector<1x384xf32> to vector<16x384xf32>
    %56 = arith.mulf %54, %55 : vector<16x384xf32>
    %57 = arith.addf %51, %56 : vector<16x384xf32>
    %c0_6 = arith.constant 0 : index
    %c0_7 = arith.constant 0 : index
    %58 = vector.load %arg4[%c0_6, %c0_7] : memref<16x1xf32, #tpu.memory_space<vmem>>, vector<16x1xf32>
    %59 = vector.broadcast %58 : vector<16x1xf32> to vector<16x384xf32>
    %60 = arith.mulf %57, %59 : vector<16x384xf32>
    %c0_8 = arith.constant 0 : index
    %c0_9 = arith.constant 0 : index
    %61 = vector.load %arg5[%c0_8, %c0_9] : memref<16x1xf32, #tpu.memory_space<vmem>>, vector<16x1xf32>
    %62 = vector.broadcast %61 : vector<16x1xf32> to vector<16x384xf32>
    %63 = arith.addf %60, %62 : vector<16x384xf32>
    %cst_10 = arith.constant 0.000000e+00 : f32
    %64 = vector.broadcast %cst_10 : f32 to vector<16x384xf32>
    %65 = arith.maximumf %63, %64 : vector<16x384xf32>
    %66 = vector.broadcast %2 : vector<1x384xf32> to vector<16x384xf32>
    %67 = arith.mulf %65, %66 : vector<16x384xf32>
    %c19_i32_11 = arith.constant 19 : i32
    %68 = tpu.dynamic_rotate %67 by %c19_i32_11 dim 1 : vector<16x384xf32>, i32 -> vector<16x384xf32>
    %c0_12 = arith.constant 0 : index
    %c0_13 = arith.constant 0 : index
    %69 = vector.load %arg10[%c0_12, %c0_13] : memref<144x384xf32, #tpu.memory_space<vmem>>, vector<16x384xf32>
    tpu.vector_store %arg10[%c0_12, %c0_13], %68 {strides = array<i32>} : memref<144x384xf32, #tpu.memory_space<vmem>>, vector<16x384xf32>,
    %c18_i32_14 = arith.constant 18 : i32
    %70 = tpu.dynamic_rotate %67 by %c18_i32_14 dim 1 : vector<16x384xf32>, i32 -> vector<16x384xf32>
    %c16 = arith.constant 16 : index
    %c0_15 = arith.constant 0 : index
    %71 = vector.load %arg10[%c16, %c0_15] : memref<144x384xf32, #tpu.memory_space<vmem>>, vector<16x384xf32>
    tpu.vector_store %arg10[%c16, %c0_15], %70 {strides = array<i32>} : memref<144x384xf32, #tpu.memory_space<vmem>>, vector<16x384xf32>,
    %c17_i32_16 = arith.constant 17 : i32
    %72 = tpu.dynamic_rotate %67 by %c17_i32_16 dim 1 : vector<16x384xf32>, i32 -> vector<16x384xf32>
    %c32 = arith.constant 32 : index
    %c0_17 = arith.constant 0 : index
    %73 = vector.load %arg10[%c32, %c0_17] : memref<144x384xf32, #tpu.memory_space<vmem>>, vector<16x384xf32>
    tpu.vector_store %arg10[%c32, %c0_17], %72 {strides = array<i32>} : memref<144x384xf32, #tpu.memory_space<vmem>>, vector<16x384xf32>,
    %c1_i32_18 = arith.constant 1 : i32
    %74 = tpu.dynamic_rotate %67 by %c1_i32_18 dim 1 : vector<16x384xf32>, i32 -> vector<16x384xf32>
    %c48 = arith.constant 48 : index
    %c0_19 = arith.constant 0 : index
    %75 = vector.load %arg10[%c48, %c0_19] : memref<144x384xf32, #tpu.memory_space<vmem>>, vector<16x384xf32>
    tpu.vector_store %arg10[%c48, %c0_19], %74 {strides = array<i32>} : memref<144x384xf32, #tpu.memory_space<vmem>>, vector<16x384xf32>,
    %c64 = arith.constant 64 : index
    %c0_20 = arith.constant 0 : index
    %76 = vector.load %arg10[%c64, %c0_20] : memref<144x384xf32, #tpu.memory_space<vmem>>, vector<16x384xf32>
    tpu.vector_store %arg10[%c64, %c0_20], %67 {strides = array<i32>} : memref<144x384xf32, #tpu.memory_space<vmem>>, vector<16x384xf32>,
    %c383_i32_21 = arith.constant 383 : i32
    %77 = tpu.dynamic_rotate %67 by %c383_i32_21 dim 1 : vector<16x384xf32>, i32 -> vector<16x384xf32>
    %c80 = arith.constant 80 : index
    %c0_22 = arith.constant 0 : index
    %78 = vector.load %arg10[%c80, %c0_22] : memref<144x384xf32, #tpu.memory_space<vmem>>, vector<16x384xf32>
    tpu.vector_store %arg10[%c80, %c0_22], %77 {strides = array<i32>} : memref<144x384xf32, #tpu.memory_space<vmem>>, vector<16x384xf32>,
    %c367_i32_23 = arith.constant 367 : i32
    %79 = tpu.dynamic_rotate %67 by %c367_i32_23 dim 1 : vector<16x384xf32>, i32 -> vector<16x384xf32>
    %c96 = arith.constant 96 : index
    %c0_24 = arith.constant 0 : index
    %80 = vector.load %arg10[%c96, %c0_24] : memref<144x384xf32, #tpu.memory_space<vmem>>, vector<16x384xf32>
    tpu.vector_store %arg10[%c96, %c0_24], %79 {strides = array<i32>} : memref<144x384xf32, #tpu.memory_space<vmem>>, vector<16x384xf32>,
    %c366_i32_25 = arith.constant 366 : i32
    %81 = tpu.dynamic_rotate %67 by %c366_i32_25 dim 1 : vector<16x384xf32>, i32 -> vector<16x384xf32>
    %c112 = arith.constant 112 : index
    %c0_26 = arith.constant 0 : index
    %82 = vector.load %arg10[%c112, %c0_26] : memref<144x384xf32, #tpu.memory_space<vmem>>, vector<16x384xf32>
    tpu.vector_store %arg10[%c112, %c0_26], %81 {strides = array<i32>} : memref<144x384xf32, #tpu.memory_space<vmem>>, vector<16x384xf32>,
    %c365_i32_27 = arith.constant 365 : i32
    %83 = tpu.dynamic_rotate %67 by %c365_i32_27 dim 1 : vector<16x384xf32>, i32 -> vector<16x384xf32>
    %c128 = arith.constant 128 : index
    %c0_28 = arith.constant 0 : index
    %84 = vector.load %arg10[%c128, %c0_28] : memref<144x384xf32, #tpu.memory_space<vmem>>, vector<16x384xf32>
    tpu.vector_store %arg10[%c128, %c0_28], %83 {strides = array<i32>} : memref<144x384xf32, #tpu.memory_space<vmem>>, vector<16x384xf32>,
    %c0_29 = arith.constant 0 : index
    %c0_30 = arith.constant 0 : index
    %85 = vector.load %arg6[%c0_29, %c0_30] : memref<16x144xf32, #tpu.memory_space<vmem>>, vector<16x144xf32>
    %c0_31 = arith.constant 0 : index
    %c0_32 = arith.constant 0 : index
    %86 = vector.load %arg10[%c0_31, %c0_32] : memref<144x384xf32, #tpu.memory_space<vmem>>, vector<144x384xf32>
    %cst_33 = arith.constant dense<0.000000e+00> : vector<16x384xf32>
    %87 = tpu.matmul %85, %86, %cst_33 {dimension_numbers = #tpu.dot_dimension_numbers<[1], [0], [0], [1], [0, 0, 1, 1], [], []>} : vector<16x144xf32>, vector<144x384xf32>, vector<16x384xf32> -> vector<16x384xf32>
    %c0_34 = arith.constant 0 : index
    %c0_35 = arith.constant 0 : index
    %88 = vector.load %arg7[%c0_34, %c0_35] : memref<16x1xf32, #tpu.memory_space<vmem>>, vector<16x1xf32>
    %89 = vector.broadcast %88 : vector<16x1xf32> to vector<16x384xf32>
    %90 = arith.mulf %87, %89 : vector<16x384xf32>
    %c0_36 = arith.constant 0 : index
    %c0_37 = arith.constant 0 : index
    %91 = vector.load %arg8[%c0_36, %c0_37] : memref<16x1xf32, #tpu.memory_space<vmem>>, vector<16x1xf32>
    %92 = vector.broadcast %91 : vector<16x1xf32> to vector<16x384xf32>
    %93 = arith.addf %90, %92 : vector<16x384xf32>
    %cst_38 = arith.constant 0.000000e+00 : f32
    %94 = vector.broadcast %cst_38 : f32 to vector<16x384xf32>
    %95 = arith.maximumf %93, %94 : vector<16x384xf32>
    %c0_39 = arith.constant 0 : index
    %c0_40 = arith.constant 0 : index
    %96 = vector.load %arg9[%c0_39, %c0_40] : memref<16x384xf32, #tpu.memory_space<vmem>>, vector<16x384xf32>
    tpu.vector_store %arg9[%c0_39, %c0_40], %95 {strides = array<i32>} : memref<16x384xf32, #tpu.memory_space<vmem>>, vector<16x384xf32>,
    return
  }
  func.func @transform_0(%arg0: i32) -> (i32, i32, i32) {
    %c0_i32 = arith.constant 0 : i32
    %c0_i32_0 = arith.constant 0 : i32
    %c0_i32_1 = arith.constant 0 : i32
    return %arg0, %c0_i32, %c0_i32_0 : i32, i32, i32
  }
  func.func @transform_1(%arg0: i32) -> (i32, i32) {
    %c0_i32 = arith.constant 0 : i32
    %c0_i32_0 = arith.constant 0 : i32
    %c0_i32_1 = arith.constant 0 : i32
    return %c0_i32, %c0_i32_0 : i32, i32
  }
  func.func @transform_2(%arg0: i32) -> (i32, i32) {
    %c0_i32 = arith.constant 0 : i32
    %c0_i32_0 = arith.constant 0 : i32
    %c0_i32_1 = arith.constant 0 : i32
    return %c0_i32, %c0_i32_0 : i32, i32
  }
  func.func @transform_3(%arg0: i32) -> (i32, i32) {
    %c0_i32 = arith.constant 0 : i32
    %c0_i32_0 = arith.constant 0 : i32
    %c0_i32_1 = arith.constant 0 : i32
    return %c0_i32, %c0_i32_0 : i32, i32
  }
  func.func @transform_4(%arg0: i32) -> (i32, i32) {
    %c0_i32 = arith.constant 0 : i32
    %c0_i32_0 = arith.constant 0 : i32
    %c0_i32_1 = arith.constant 0 : i32
    return %c0_i32, %c0_i32_0 : i32, i32
  }
  func.func @transform_5(%arg0: i32) -> (i32, i32) {
    %c0_i32 = arith.constant 0 : i32
    %c0_i32_0 = arith.constant 0 : i32
    %c0_i32_1 = arith.constant 0 : i32
    return %c0_i32, %c0_i32_0 : i32, i32
  }
  func.func @transform_6(%arg0: i32) -> (i32, i32) {
    %c0_i32 = arith.constant 0 : i32
    %c0_i32_0 = arith.constant 0 : i32
    %c0_i32_1 = arith.constant 0 : i32
    return %c0_i32, %c0_i32_0 : i32, i32
  }
  func.func @transform_7(%arg0: i32) -> (i32, i32) {
    %c0_i32 = arith.constant 0 : i32
    %c0_i32_0 = arith.constant 0 : i32
    %c0_i32_1 = arith.constant 0 : i32
    return %c0_i32, %c0_i32_0 : i32, i32
  }
  func.func @transform_8(%arg0: i32) -> (i32, i32) {
    %c0_i32 = arith.constant 0 : i32
    %c0_i32_0 = arith.constant 0 : i32
    return %arg0, %c0_i32 : i32, i32
  }
}

</mosaic_0001>

<bundles_post_ra>
// kernel: stem_block.1
= control target key start
LH: loop header
LB: loop body
LE: loop exit
PB: predicated region body
PF: predicated region fallthrough
CT: control target
= control target key end

     0   :  { %s1401_s27 = smov 0   ;;  %s1986_s0 = inlined_call_operand.vmem [shape: f32[2,1,384], index: 0, kind: input, shape index: {}]   ;;  %s1987_s1 = inlined_call_operand.vmem [shape: f32[1,384], index: 1, kind: input, shape index: {}]   ;;  %s1988_s2 = inlined_call_operand.vmem [shape: f32[16,9], index: 2, kind: input, shape index: {}]   ;;  %s1989_s3 = inlined_call_operand.vmem [shape: f32[16,1], index: 3, kind: input, shape index: {}]   ;;  %s1990_s4 = inlined_call_operand.vmem [shape: f32[16,1], index: 4, kind: input, shape index: {}]   ;;  %s1991_s5 = inlined_call_operand.vmem [shape: f32[16,144], index: 5, kind: input, shape index: {}]   ;;  %s1992_s6 = inlined_call_operand.vmem [shape: f32[16,1], index: 6, kind: input, shape index: {}]   ;;  %s1993_s7 = inlined_call_operand.vmem [shape: f32[16,1], index: 7, kind: input, shape index: {}]   ;;  %s1994_s8 = inlined_call_operand.vmem [shape: f32[32,384], index: 8, kind: output, shape index: {}]  }
   0x1 LB: > { %s1407_s28 = sadd.s32 4294967295, %s1336_s27   ;;  %p1275_p0 = scmp.ge.s32.totalorder %s1336_s27, 1  ;;  %s1336_s27 = sphi %s1401_s27, %s18_s27  }
   0x2   : > { %p261_p1 = scmp.lt.s32.totalorder %s1336_s27, 3 }
   0x4   : > { %p262_p2 = pnand %p1275_p0, %p261_p1 }
   0x5   : > { %p295_p3 = scmp.lt.s32.totalorder (!%p262_p2), %s1407_s28, 1  ;;  %s1340_s16 = smov (!%p262_p2), 19  }
   0x6   : > { %265 = sbr.rel (%p262_p2) target bundleno = 672 (0x2a0), region = 52  ;;  %s1341_s17 = smov (!%p262_p2), 18  }
   0x7   : > { %s1343_s18 = smov (!%p262_p2), 17   ;;  %s1345_s19 = smov (!%p262_p2), 1  }
   0x8   : > { %s1347_s20 = smov (!%p262_p2), 127   ;;  %s1349_s21 = smov (!%p262_p2), 111  }
   0x9   : > { %s1351_s22 = smov (!%p262_p2), 110   ;;  %s1354_s23 = smov (!%p262_p2), 109  }
   0xb   : > { %v1414_v0 = vld [vmem:[%s1988_s2 + $0x8] sm:$0xff]  ;;  %v311_v1 = vlaneseq  ;;  %v1338_v2 = vmov 1   ;;  %s296_s9 = scalar_select %p295_p3, %s1407_s28, 1  ;;  %v1339_v5 = vmov 0   ;;  %v1437_v9 = vld [vmem:[%s1988_s2] sm:$0xff]  ;;  %v1342_v13 = vmov 2  }
   0xc   : > { %1312 = vset.pattern.permute.xlu0 %v1338_v2  ;;  %1314 = vset.pattern.permute.xlu1 %v1338_v2  ;;  %v1344_v14 = vmov 3   ;;  %v1346_v15 = vmov 4   ;;  %v1348_v16 = vmov 6   ;;  %v1350_v17 = vmov 7   ;;  %v687_v20 = vld [vmem:[%s1989_s3 + $0x8] sm:$0xff]  ;;  %v704_v21 = vld [vmem:[%s1990_s4] sm:$0xff] }
   0xd   : > { %387 = vperm.xlu0 %1312, %v1414_v0   ;;  %v1420_v3 = vshrl.u32 %v311_v1, 7  ;;  %s1284_s10 = smul.u32 3, %s296_s9  ;;  %v1352_v18 = vmov 8   ;;  %v1353_v19 = vmov 5   ;;  %v686_v22 = vld [vmem:[%s1989_s3] sm:$0xff]  ;;  %v705_v23 = vld [vmem:[%s1990_s4 + $0x8] sm:$0xff] }
   0xe   : > { %v1531_v31 = vand.u32 127, %v311_v1  ;;  %vm1006_vm8 = vcmask 130048  }
   0xf   : > { %v1423_v4 = vsub.s32 0, %v1420_v3  ;;  %s298_s13 = scalar_lea.vmem %s1986_s0, %s1284_s10  ;;  %v317_v6 = vsub.s32 1, %v1420_v3  ;;  %v321_v10 = vsub.s32 2, %v1420_v3  ;;  %s1276_s10 = sshll.u32 %s1407_s28, 1 }
  0x10   : > { %v306_v7 = vld [vmem:[%s298_s13] sm:$0x7]  ;;  %vm378_vm0 = vcmp.lt.s32.totalorder %v1531_v31, 18  ;;  %vm334_vm1 = vcmp.lt.s32.totalorder %v1531_v31, 19  ;;  %vm420_vm2 = vcmp.lt.s32.totalorder %v1531_v31, 17  ;;  %vm462_vm3 = vcmp.lt.s32.totalorder %v1531_v31, 1 }
  0x11   : > { %1313 = vset.pattern.permute.xlu0 %v1339_v5  ;;  %v1432_v8 = vrot.slane %v306_v7, %v1423_v4  ;;  %v1444_v11 = vrot.slane %v306_v7, %v317_v6  ;;  %v1449_v12 = vrot.slane %v306_v7, %v321_v10  ;;  %vm524_vm4 = vcmp.lt.s32.totalorder %v1531_v31, 127  ;;  %p300_p4 = scmp.lt.s32.totalorder %s1276_s10, 3 }
  0x12   : > { %345 = vperm.xlu0 %1313, %v1414_v0   ;;  %vm566_vm5 = vcmp.lt.s32.totalorder %v1531_v31, 111  ;;  %vm608_vm6 = vcmp.lt.s32.totalorder %v1531_v31, 110  ;;  %vm650_vm7 = vcmp.lt.s32.totalorder %v1531_v31, 109 }
  0x13   : > { %326 = vrot.lane.b32.xlu1 %v1432_v8, %s1340_s16  ;;  %s1996_s10 = smov (!%p300_p4, %s1276_s10), 3 }
  0x14   : > { %s1285_s11 = smul.u32 24, %s1996_s10 }
  0x16   : > { %340 = vperm.xlu0 %1313, %v1437_v9   ;;  %s304_s14 = scalar_lea.vmem %s1994_s8, %s1285_s11 }
  0x17   : > { %328 = vrot.lane.b32.xlu1 %v1444_v11, %s1340_s16 }
  0x1a   : > { %376 = vrot.lane.b32.xlu0 %v1449_v12, %s1341_s17 }
  0x1b   : > { %1315 = vset.pattern.permute.xlu0 %v1342_v13  ;;  %330 = vrot.lane.b32.xlu1 %v1449_v12, %s1340_s16 }
  0x1e   : > { %429 = vperm.xlu0 %1315, %v1414_v0  }
  0x1f   : > { %372 = vrot.lane.b32.xlu1 %v1432_v8, %s1341_s17 }
  0x22   : > { %418 = vrot.lane.b32.xlu0 %v1449_v12, %s1343_s18 }
  0x23   : > { %1317 = vset.pattern.permute.xlu0 %v1344_v14  ;;  %374 = vrot.lane.b32.xlu1 %v1444_v11, %s1341_s17 }
  0x26   : > { %471 = vperm.xlu0 %1317, %v1414_v0  }
  0x27   : > { %383 = vperm.xlu1 %1314, %v1437_v9  }
  0x2a   : > { %460 = vrot.lane.b32.xlu0 %v1449_v12, %s1345_s19 }
  0x2b   : > { %1319 = vset.pattern.permute.xlu0 %v1346_v15  ;;  %414 = vrot.lane.b32.xlu1 %v1432_v8, %s1343_s18 }
  0x2c   : > { %1316 = vset.pattern.permute.xlu1 %v1342_v13 }
  0x2e   : > { %503 = vperm.xlu0 %1319, %v1414_v0  }
  0x2f   : > { %416 = vrot.lane.b32.xlu1 %v1444_v11, %s1343_s18 }
  0x32   : > { %518 = vrot.lane.b32.xlu0 %v1432_v8, %s1347_s20 }
  0x33   : > { %1322 = vset.pattern.permute.xlu0 %v1348_v16  ;;  %425 = vperm.xlu1 %1316, %v1437_v9  }
  0x36   : > { %522 = vrot.lane.b32.xlu0 %v1449_v12, %s1347_s20 }
  0x37   : > { %456 = vrot.lane.b32.xlu1 %v1432_v8, %s1345_s19 }
  0x38   : > { %1318 = vset.pattern.permute.xlu1 %v1344_v14 }
  0x3a   : > { %575 = vperm.xlu0 %1322, %v1414_v0  }
  0x3b   : > { %458 = vrot.lane.b32.xlu1 %v1444_v11, %s1345_s19 }
  0x3e   : > { %564 = vrot.lane.b32.xlu0 %v1449_v12, %s1349_s21 }
  0x3f   : > { %1324 = vset.pattern.permute.xlu0 %v1350_v17  ;;  %467 = vperm.xlu1 %1318, %v1437_v9  }
  0x42   : > { %617 = vperm.xlu0 %1324, %v1414_v0  }
  0x43   : > { %1320 = vset.pattern.permute.xlu1 %v1346_v15 }
  0x44   : > { %499 = vperm.xlu1 %1320, %v1437_v9  }
  0x46   : > { %606 = vrot.lane.b32.xlu0 %v1449_v12, %s1351_s22 }
  0x47   : > { %1326 = vset.pattern.permute.xlu0 %v1352_v18 }
  0x48   : > { %1321 = vset.pattern.permute.xlu1 %v1353_v19 }
  0x49   : > { %533 = vperm.xlu1 %1321, %v1414_v0  }
  0x4a   : > { %659 = vperm.xlu0 %1326, %v1414_v0  }
  0x4d   : > { %520 = vrot.lane.b32.xlu1 %v1444_v11, %s1347_s20 }
  0x4e   : > { %648 = vrot.lane.b32.xlu0 %v1449_v12, %s1354_s23 }
  0x4f   : > { %1328 = vset.pattern.permute.xlu0 %v1339_v5 }
  0x51   : > { %529 = vperm.xlu1 %1321, %v1437_v9  }
  0x52   : > { %695 = vperm.xlu0 %1328, %v687_v20  }
  0x55   : > { %560 = vrot.lane.b32.xlu1 %v1432_v8, %s1349_s21 }
  0x56   : > { %708 = vperm.xlu0 %1328, %v704_v21   ;;  %1323 = vset.pattern.permute.xlu1 %v1348_v16 }
  0x59   : > { %562 = vrot.lane.b32.xlu1 %v1444_v11, %s1349_s21 }
  0x5d   : > { %571 = vperm.xlu1 %1323, %v1437_v9  }
  0x61   : > { %602 = vrot.lane.b32.xlu1 %v1432_v8, %s1351_s22 }
  0x62   : > { %1325 = vset.pattern.permute.xlu1 %v1350_v17 }
  0x65   : > { %604 = vrot.lane.b32.xlu1 %v1444_v11, %s1351_s22 }
  0x69   : > { %613 = vperm.xlu1 %1325, %v1437_v9  }
  0x6d   : > { %644 = vrot.lane.b32.xlu1 %v1432_v8, %s1354_s23 }
  0x6e   : > { %1327 = vset.pattern.permute.xlu1 %v1352_v18 }
  0x71   : > { %646 = vrot.lane.b32.xlu1 %v1444_v11, %s1354_s23 }
  0x75   : > { %655 = vperm.xlu1 %1327, %v1437_v9  }
  0x79   : > { %1329 = vset.pattern.permute.xlu1 %v1339_v5 }
  0x7a   : > { %690 = vperm.xlu1 %1329, %v686_v22  }
  0x7e   : > { %713 = vperm.xlu1 %1329, %v705_v23  }
  0x85   : > { %v327_v24 = vpop.permute.xlu1 %326 }
  0x88   : > { %v388_v26 = vpop.permute.xlu0 %387 }
  0x89   : > { %v329_v25 = vpop.permute.xlu1 %328 }
  0x8a   : > { %v336_v60 = vsel %vm334_vm1, %v327_v24, %v329_v25 }
  0x8b   : > { %v355_v2 = vrot.slane %v336_v60, %v1423_v4 }
  0x8d   : > { %v331_v27 = vpop.permute.xlu1 %330  ;;  %v1526_v28 = vpop.permute.xlu0 %345 }
  0x8e   : > { %v337_v61 = vsel %vm334_vm1, %v331_v27, %v327_v24  ;;  %v335_v1 = vsel %vm334_vm1, %v329_v25, %v331_v27  ;;  %v364_v22 = vmul.f32 %v355_v2, %v1526_v28 }
  0x8f   : > { %v351_v7 = vrot.slane %v337_v61, %v1423_v4  ;;  %v359_v15 = vrot.slane %v335_v1, %v1423_v4 }
  0x91   : > { %v373_v29 = vpop.permute.xlu1 %372  ;;  %v1528_v30 = vpop.permute.xlu0 %340  ;;  %v363_v27 = vmul.f32 %v351_v7, %v1526_v28 }
  0x95   : > { %v375_v32 = vpop.permute.xlu1 %374  ;;  %v377_v33 = vpop.permute.xlu0 %376 }
  0x96   : > { %v379_v34 = vsel %vm378_vm0, %v375_v32, %v377_v33  ;;  %v380_v35 = vsel %vm378_vm0, %v373_v29, %v375_v32  ;;  %v381_v58 = vsel %vm378_vm0, %v377_v33, %v373_v29  ;;  %v361_v29 = vmul.f32 %v355_v2, %v1528_v30 }
  0x97   : > { %v397_v36 = vrot.slane %v380_v35, %v1423_v4  ;;  %v401_v37 = vrot.slane %v379_v34, %v1423_v4  ;;  %v393_v62 = vrot.slane %v381_v58, %v1423_v4  ;;  %v365_v35 = vmul.f32 %v359_v15, %v1526_v28 }
  0x99   : > { %v1544_v42 = vpop.permute.xlu0 %429  ;;  %v405_v16 = vmul.f32 %v393_v62, %v388_v26  ;;  %v406_v18 = vmul.f32 %v397_v36, %v388_v26  ;;  %v407_v23 = vmul.f32 %v401_v37, %v388_v26  ;;  %v360_v26 = vmul.f32 %v351_v7, %v1528_v30 }
  0x9b   : > { %v413_v58 = vadd.f32 %v407_v23, %v365_v35 }
  0x9d   : > { %v419_v45 = vpop.permute.xlu0 %418 }
  0xa1   : > { %v1548_v47 = vpop.permute.xlu0 %471 }
  0xa2   : > { %v384_v38 = vpop.permute.xlu1 %383 }
  0xa3   : > { %v1540_v39 = vmul.f32 %v397_v36, %v384_v38  ;;  %v1542_v40 = vmul.f32 %v401_v37, %v384_v38  ;;  %v402_v24 = vmul.f32 %v393_v62, %v384_v38 }
  0xa5   : > { %v461_v49 = vpop.permute.xlu0 %460  ;;  %v409_v60 = vadd.f32 %v1540_v39, %v361_v29 }
  0xa6   : > { %v415_v41 = vpop.permute.xlu1 %414 }
  0xa7   : > { %v423_v63 = vsel %vm420_vm2, %v419_v45, %v415_v41 }
  0xa8   : > { %v435_v9 = vrot.slane %v423_v63, %v1423_v4 }
  0xa9   : > { %v1552_v51 = vpop.permute.xlu0 %503 }
  0xaa   : > { %v417_v43 = vpop.permute.xlu1 %416  ;;  %v447_v32 = vmul.f32 %v435_v9, %v1544_v42  ;;  %v509_v63 = vmul.f32 %v1552_v51, %v1432_v8 }
  0xab   : > { %v422_v5 = vsel %vm420_vm2, %v415_v41, %v417_v43  ;;  %v421_v19 = vsel %vm420_vm2, %v417_v43, %v419_v45  ;;  %v362_v41 = vmul.f32 %v359_v15, %v1528_v30  ;;  %v411_v43 = vadd.f32 %v405_v16, %v363_v27 }
  0xac   : > { %v439_v20 = vrot.slane %v422_v5, %v1423_v4  ;;  %v443_v36 = vrot.slane %v421_v19, %v1423_v4  ;;  %v412_v45 = vadd.f32 %v406_v18, %v364_v22 }
  0xad   : > { %v1556_v53 = vpop.permute.xlu0 %518  ;;  %v410_v61 = vadd.f32 %v1542_v40, %v362_v41  ;;  %v453_v62 = vadd.f32 %v447_v32, %v411_v43  ;;  %v510_v40 = vmul.f32 %v1552_v51, %v1444_v11 }
  0xae   : > { %v1546_v44 = vpop.permute.xlu1 %425  ;;  %v449_v30 = vmul.f32 %v443_v36, %v1544_v42 }
  0xaf   : > { %v444_v1 = vmul.f32 %v435_v9, %v1546_v44  ;;  %v445_v2 = vmul.f32 %v439_v20, %v1546_v44  ;;  %v446_v39 = vmul.f32 %v443_v36, %v1546_v44  ;;  %v511_v44 = vmul.f32 %v1552_v51, %v1449_v12 }
  0xb1   : > { %v1562_v56 = vpop.permute.xlu0 %522 }
  0xb2   : > { %v457_v46 = vpop.permute.xlu1 %456 }
  0xb3   : > { %v465_v13 = vsel %vm462_vm3, %v461_v49, %v457_v46 }
  0xb4   : > { %v477_v25 = vrot.slane %v465_v13, %v1423_v4 }
  0xb5   : > { %v1570_v59 = vpop.permute.xlu0 %575 }
  0xb6   : > { %v459_v48 = vpop.permute.xlu1 %458 }
  0xb7   : > { %v464_v21 = vsel %vm462_vm3, %v457_v46, %v459_v48  ;;  %v463_v33 = vsel %vm462_vm3, %v459_v48, %v461_v49  ;;  %v448_v46 = vmul.f32 %v439_v20, %v1544_v42  ;;  %v408_v48 = vadd.f32 %v402_v24, %v360_v26 }
  0xb8   : > { %v481_v37 = vrot.slane %v464_v21, %v1423_v4  ;;  %v489_v49 = vmul.f32 %v477_v25, %v1548_v47  ;;  %v485_v28 = vrot.slane %v463_v33, %v1423_v4  ;;  %v527_v42 = vsel %vm524_vm4, %v1562_v56, %v1556_v53 }
  0xb9   : > { %v1591_v14 = vpop.permute.xlu0 %564  ;;  %v454_v13 = vadd.f32 %v448_v46, %v412_v45  ;;  %v450_v23 = vadd.f32 %v444_v1, %v408_v48  ;;  %v451_v24 = vadd.f32 %v445_v2, %v409_v60  ;;  %v547_v29 = vrot.slane %v527_v42, %v1423_v4 }
  0xba   : > { %v1550_v50 = vpop.permute.xlu1 %467  ;;  %v490_v5 = vmul.f32 %v481_v37, %v1548_v47  ;;  %v495_v9 = vadd.f32 %v489_v49, %v453_v62  ;;  %v491_v16 = vmul.f32 %v485_v28, %v1548_v47  ;;  %v455_v47 = vadd.f32 %v449_v30, %v413_v58 }
  0xbb   : > { %v486_v18 = vmul.f32 %v477_v25, %v1550_v50  ;;  %v487_v20 = vmul.f32 %v481_v37, %v1550_v50  ;;  %v488_v21 = vmul.f32 %v485_v28, %v1550_v50 }
  0xbc   : > { %v496_v25 = vadd.f32 %v490_v5, %v454_v13 }
  0xbd   : > { %v1610_v34 = vpop.permute.xlu0 %617  ;;  %v492_v33 = vadd.f32 %v486_v18, %v450_v23  ;;  %v493_v26 = vadd.f32 %v487_v20, %v451_v24 }
  0xbe   : > { %v516_v43 = vadd.f32 %v510_v40, %v496_v25 }
  0xbf   : > { %v1554_v52 = vpop.permute.xlu1 %499 }
  0xc0   : > { %v506_v37 = vmul.f32 %v1554_v52, %v1432_v8  ;;  %v507_v45 = vmul.f32 %v1554_v52, %v1444_v11  ;;  %v508_v8 = vmul.f32 %v1554_v52, %v1449_v12 }
  0xc1   : > { %v607_v15 = vpop.permute.xlu0 %606 }
  0xc2   : > { %v513_v13 = vadd.f32 %v507_v45, %v493_v26 }
  0xc4   : > { %v1558_v54 = vpop.permute.xlu1 %533 }
  0xc5   : > { %v1659_v32 = vpop.permute.xlu0 %659  ;;  %v553_v49 = vmul.f32 %v547_v29, %v1558_v54 }
  0xc8   : > { %v1560_v55 = vpop.permute.xlu1 %520 }
  0xc9   : > { %v526_v19 = vsel %vm524_vm4, %v1556_v53, %v1560_v55  ;;  %v525_v22 = vsel %vm524_vm4, %v1560_v55, %v1562_v56  ;;  %v452_v53 = vadd.f32 %v446_v39, %v410_v61  ;;  %v497_v55 = vadd.f32 %v491_v16, %v455_v47  ;;  %v649_v52 = vpop.permute.xlu0 %648 }
  0xca   : > { %v539_v51 = vrot.slane %v526_v19, %v1423_v4  ;;  %v515_v56 = vadd.f32 %v509_v63, %v495_v9  ;;  %v543_v35 = vrot.slane %v525_v22, %v1423_v4  ;;  %v512_v63 = vadd.f32 %v506_v37, %v492_v33 }
  0xcb   : > { %v494_v36 = vadd.f32 %v488_v21, %v452_v53  ;;  %v517_v60 = vadd.f32 %v511_v44, %v497_v55 }
  0xcc   : > { %v1565_v57 = vpop.permute.xlu1 %529  ;;  %v551_v28 = vmul.f32 %v539_v51, %v1558_v54  ;;  %v552_v11 = vmul.f32 %v543_v35, %v1558_v54 }
  0xcd   : > { %v548_v61 = vmul.f32 %v539_v51, %v1565_v57  ;;  %v514_v39 = vadd.f32 %v508_v8, %v494_v36  ;;  %v559_v40 = vadd.f32 %v553_v49, %v517_v60 }
  0xce   : > { %v557_v42 = vadd.f32 %v551_v28, %v515_v56  ;;  %v558_v9 = vadd.f32 %v552_v11, %v516_v43 }
  0xd0   : > { %v1580_v0 = vpop.permute.xlu1 %560 }
  0xd1   : > { %v569_v50 = vsel %vm566_vm5, %v1591_v14, %v1580_v0 }
  0xd2   : > { %v589_v46 = vrot.slane %v569_v50, %v1423_v4 }
  0xd4   : > { %v1595_v17 = vpop.permute.xlu1 %562  ;;  %v595_v30 = vmul.f32 %v589_v46, %v1570_v59 }
  0xd5   : > { %v567_v41 = vsel %vm566_vm5, %v1595_v17, %v1591_v14  ;;  %v568_v58 = vsel %vm566_vm5, %v1580_v0, %v1595_v17  ;;  %v549_v0 = vmul.f32 %v543_v35, %v1565_v57  ;;  %v550_v17 = vmul.f32 %v547_v29, %v1565_v57 }
  0xd6   : > { %v585_v62 = vrot.slane %v567_v41, %v1423_v4  ;;  %v581_v12 = vrot.slane %v568_v58, %v1423_v4  ;;  %v554_v57 = vadd.f32 %v548_v61, %v512_v63  ;;  %v601_v21 = vadd.f32 %v595_v30, %v559_v40 }
  0xd7   : > { %v555_v19 = vadd.f32 %v549_v0, %v513_v13  ;;  %v556_v20 = vadd.f32 %v550_v17, %v514_v39 }
  0xd8   : > { %v1616_v38 = vpop.permute.xlu1 %571  ;;  %v594_v22 = vmul.f32 %v585_v62, %v1570_v59 }
  0xd9   : > { %v591_v16 = vmul.f32 %v585_v62, %v1616_v38  ;;  %v590_v24 = vmul.f32 %v581_v12, %v1616_v38  ;;  %v592_v29 = vmul.f32 %v589_v46, %v1616_v38 }
  0xda   : > { %v600_v26 = vadd.f32 %v594_v22, %v558_v9 }
  0xdb   : > { %v597_v51 = vadd.f32 %v591_v16, %v555_v19  ;;  %v596_v8 = vadd.f32 %v590_v24, %v554_v57  ;;  %v598_v49 = vadd.f32 %v592_v29, %v556_v20  ;;  %v307_v57 = vld [vmem:[%s1987_s1] sm:$0x7] }
  0xdc   : > { %v603_v7 = vpop.permute.xlu1 %602 }
  0xdd   : > { %v611_v1 = vsel %vm608_vm6, %v607_v15, %v603_v7 }
  0xde   : > { %v631_v44 = vrot.slane %v611_v1, %v1423_v4 }
  0xe0   : > { %v605_v27 = vpop.permute.xlu1 %604  ;;  %v637_v56 = vmul.f32 %v631_v44, %v1610_v34 }
  0xe1   : > { %v609_v14 = vsel %vm608_vm6, %v605_v27, %v607_v15  ;;  %v610_v54 = vsel %vm608_vm6, %v603_v7, %v605_v27  ;;  %v593_v15 = vmul.f32 %v581_v12, %v1570_v59 }
  0xe2   : > { %v627_v2 = vrot.slane %v609_v14, %v1423_v4  ;;  %v623_v7 = vrot.slane %v610_v54, %v1423_v4  ;;  %v643_v60 = vadd.f32 %v637_v56, %v601_v21  ;;  %v1184_v56 = vld [vmem:[%s1993_s7 + $0x8] sm:$0xff] }
  0xe3   : > { %v599_v59 = vadd.f32 %v593_v15, %v557_v42 }
  0xe4   : > { %v614_v48 = vpop.permute.xlu1 %613  ;;  %v635_v33 = vmul.f32 %v623_v7, %v1610_v34  ;;  %v636_v35 = vmul.f32 %v627_v2, %v1610_v34 }
  0xe5   : > { %v633_v47 = vmul.f32 %v627_v2, %v614_v48  ;;  %v632_v36 = vmul.f32 %v623_v7, %v614_v48  ;;  %v634_v37 = vmul.f32 %v631_v44, %v614_v48  ;;  %v696_v48 = vpop.permute.xlu0 %695  ;;  %v1355_v2 = vmov 0.0  }
  0xe6   : > { %v641_v11 = vadd.f32 %v635_v33, %v599_v59  ;;  %v642_v61 = vadd.f32 %v636_v35, %v600_v26  ;;  %1090 = vmatprep.subr.mxu1 %v1355_v2  ;;  %v736_v44 = vrot.slane %v307_v57, %v317_v6  ;;  %v740_v7 = vrot.slane %v307_v57, %v321_v10  ;;  %v1165_v59 = vld [vmem:[%s1992_s6] sm:$0xff] }
  0xe7   : > { %v639_v41 = vadd.f32 %v633_v47, %v597_v51  ;;  %v638_v62 = vadd.f32 %v632_v36, %v596_v8  ;;  %v640_v63 = vadd.f32 %v634_v37, %v598_v49  ;;  %v1183_v33 = vld [vmem:[%s1993_s7] sm:$0xff] }
  0xe8   : > { %v645_v5 = vpop.permute.xlu1 %644 }
  0xe9   : > { %v653_v18 = vsel %vm650_vm7, %v649_v52, %v645_v5 }
  0xea   : > { %v673_v25 = vrot.slane %v653_v18, %v1423_v4 }
  0xec   : > { %v647_v23 = vpop.permute.xlu1 %646  ;;  %v679_v45 = vmul.f32 %v673_v25, %v1659_v32 }
  0xed   : > { %v651_v27 = vsel %vm650_vm7, %v647_v23, %v649_v52  ;;  %v652_v53 = vsel %vm650_vm7, %v645_v5, %v647_v23 }
  0xee   : > { %v665_v50 = vrot.slane %v652_v53, %v1423_v4  ;;  %v669_v55 = vrot.slane %v651_v27, %v1423_v4  ;;  %v685_v12 = vadd.f32 %v679_v45, %v643_v60  ;;  %v732_v53 = vrot.slane %v307_v57, %v1423_v4 }
  0xf0   : > { %v656_v43 = vpop.permute.xlu1 %655  ;;  %v677_v38 = vmul.f32 %v665_v50, %v1659_v32  ;;  %v678_v46 = vmul.f32 %v669_v55, %v1659_v32  ;;  %v709_v32 = vpop.permute.xlu0 %708  ;;  %v703_v39 = vmul.f32 %v696_v48, %v685_v12 }
  0xf1   : > { %v675_v58 = vmul.f32 %v669_v55, %v656_v43  ;;  %v674_v28 = vmul.f32 %v665_v50, %v656_v43  ;;  %v676_v14 = vmul.f32 %v673_v25, %v656_v43  ;;  %v949_v50 = vld [vmem:[%s1991_s5 + $0x8] sm:$0xff] }
  0xf2   : > { %v683_v0 = vadd.f32 %v677_v38, %v641_v11  ;;  %v684_v17 = vadd.f32 %v678_v46, %v642_v61  ;;  %1280 = vmatprep.mubr.msk.f32.mxu1 %vm1006_vm8, %v949_v50  ;;  %1278 = vmatprep.mubr.msk.f32.mxu0 %vm1006_vm8, %v949_v50  ;;  %v1166_v55 = vld [vmem:[%s1992_s6 + $0x8] sm:$0xff] }
  0xf3   : > { %v681_v34 = vadd.f32 %v675_v58, %v639_v41  ;;  %v680_v30 = vadd.f32 %v674_v28, %v638_v62  ;;  %v682_v1 = vadd.f32 %v676_v14, %v640_v63 }
  0xf4   : > { %v701_v5 = vmul.f32 %v696_v48, %v683_v0  ;;  %v702_v13 = vmul.f32 %v696_v48, %v684_v17 }
  0xf5   : > { %v691_v52 = vpop.permute.xlu1 %690 }
  0xf6   : > { %v699_v54 = vmul.f32 %v691_v52, %v681_v34  ;;  %v698_v42 = vmul.f32 %v691_v52, %v680_v30  ;;  %v700_v9 = vmul.f32 %v691_v52, %v682_v1 }
  0xf8   : > { %v717_v16 = vadd.f32 %v709_v32, %v699_v54  ;;  %v716_v22 = vadd.f32 %v709_v32, %v698_v42  ;;  %v718_v47 = vadd.f32 %v709_v32, %v700_v9 }
  0xf9   : > { %v714_v40 = vpop.permute.xlu1 %713 }
  0xfa   : > { %v719_v18 = vadd.f32 %v714_v40, %v701_v5  ;;  %v720_v19 = vadd.f32 %v714_v40, %v702_v13  ;;  %v721_v15 = vadd.f32 %v714_v40, %v703_v39  ;;  %v723_v23 = vmax.f32 %v717_v16, 0.0 }
  0xfb   : > { %v722_v3 = vmax.f32 %v716_v22, 0.0  ;;  %v724_v6 = vmax.f32 %v718_v47, 0.0 }
  0xfc   : > { %v726_v20 = vmax.f32 %v720_v19, 0.0  ;;  %v727_v21 = vmax.f32 %v721_v15, 0.0  ;;  %v725_v24 = vmax.f32 %v719_v18, 0.0  ;;  %v1732_v10 = vmul.f32 %v736_v44, %v723_v23 }
  0xfd   : > { %v1740_v51 = vmul.f32 %v732_v53, %v722_v3  ;;  %v1742_v4 = vmul.f32 %v740_v7, %v724_v6 }
  0xfe   : > { %v1723_v25 = vmul.f32 %v736_v44, %v726_v20  ;;  %v1725_v27 = vmul.f32 %v740_v7, %v727_v21  ;;  %v1734_v29 = vmul.f32 %v732_v53, %v725_v24 }
 0x100   : > { %910 = vrot.lane.b32.xlu0 %v1725_v27, %s1351_s22  ;;  %906 = vrot.lane.b32.xlu1 %v1723_v25, %s1351_s22 }
 0x104   : > { %904 = vrot.lane.b32.xlu0 %v1732_v10, %s1351_s22  ;;  %902 = vrot.lane.b32.xlu1 %v1734_v29, %s1351_s22 }
 0x108   : > { %900 = vrot.lane.b32.xlu0 %v1740_v51, %s1351_s22  ;;  %908 = vrot.lane.b32.xlu1 %v1742_v4, %s1351_s22 }
 0x10c   : > { %886 = vrot.lane.b32.xlu0 %v1725_v27, %s1349_s21  ;;  %882 = vrot.lane.b32.xlu1 %v1723_v25, %s1349_s21 }
 0x110   : > { %880 = vrot.lane.b32.xlu0 %v1732_v10, %s1349_s21  ;;  %878 = vrot.lane.b32.xlu1 %v1734_v29, %s1349_s21 }
 0x114   : > { %876 = vrot.lane.b32.xlu0 %v1740_v51, %s1349_s21  ;;  %884 = vrot.lane.b32.xlu1 %v1742_v4, %s1349_s21 }
 0x118   : > { %862 = vrot.lane.b32.xlu0 %v1725_v27, %s1347_s20  ;;  %858 = vrot.lane.b32.xlu1 %v1723_v25, %s1347_s20 }
 0x11c   : > { %856 = vrot.lane.b32.xlu0 %v1732_v10, %s1347_s20  ;;  %854 = vrot.lane.b32.xlu1 %v1734_v29, %s1347_s20 }
 0x120   : > { %852 = vrot.lane.b32.xlu0 %v1740_v51, %s1347_s20  ;;  %860 = vrot.lane.b32.xlu1 %v1742_v4, %s1347_s20 }
 0x124   : > { %828 = vrot.lane.b32.xlu0 %v1723_v25, %s1345_s19  ;;  %824 = vrot.lane.b32.xlu1 %v1734_v29, %s1345_s19 }
 0x128   : > { %822 = vrot.lane.b32.xlu0 %v1740_v51, %s1345_s19  ;;  %832 = vrot.lane.b32.xlu1 %v1725_v27, %s1345_s19 }
 0x12c   : > { %830 = vrot.lane.b32.xlu0 %v1742_v4, %s1345_s19  ;;  %826 = vrot.lane.b32.xlu1 %v1732_v10, %s1345_s19 }
 0x130   : > { %804 = vrot.lane.b32.xlu0 %v1723_v25, %s1343_s18  ;;  %800 = vrot.lane.b32.xlu1 %v1734_v29, %s1343_s18 }
 0x134   : > { %798 = vrot.lane.b32.xlu0 %v1740_v51, %s1343_s18  ;;  %808 = vrot.lane.b32.xlu1 %v1725_v27, %s1343_s18 }
 0x138   : > { %806 = vrot.lane.b32.xlu0 %v1742_v4, %s1343_s18  ;;  %802 = vrot.lane.b32.xlu1 %v1732_v10, %s1343_s18 }
 0x13c   : > { %780 = vrot.lane.b32.xlu0 %v1723_v25, %s1341_s17  ;;  %776 = vrot.lane.b32.xlu1 %v1734_v29, %s1341_s17 }
 0x140   : > { %774 = vrot.lane.b32.xlu0 %v1740_v51, %s1341_s17  ;;  %784 = vrot.lane.b32.xlu1 %v1725_v27, %s1341_s17 }
 0x144   : > { %782 = vrot.lane.b32.xlu0 %v1742_v4, %s1341_s17  ;;  %778 = vrot.lane.b32.xlu1 %v1732_v10, %s1341_s17 }
 0x148   : > { %756 = vrot.lane.b32.xlu0 %v1723_v25, %s1340_s16  ;;  %752 = vrot.lane.b32.xlu1 %v1734_v29, %s1340_s16 }
 0x14c   : > { %750 = vrot.lane.b32.xlu0 %v1740_v51, %s1340_s16  ;;  %760 = vrot.lane.b32.xlu1 %v1725_v27, %s1340_s16 }
 0x150   : > { %758 = vrot.lane.b32.xlu0 %v1742_v4, %s1340_s16  ;;  %754 = vrot.lane.b32.xlu1 %v1732_v10, %s1340_s16 }
 0x154   : > { %934 = vrot.lane.b32.xlu0 %v1725_v27, %s1354_s23  ;;  %930 = vrot.lane.b32.xlu1 %v1723_v25, %s1354_s23 }
 0x158   : > { %928 = vrot.lane.b32.xlu0 %v1732_v10, %s1354_s23  ;;  %926 = vrot.lane.b32.xlu1 %v1734_v29, %s1354_s23 }
 0x15c   : > { %924 = vrot.lane.b32.xlu0 %v1740_v51, %s1354_s23  ;;  %932 = vrot.lane.b32.xlu1 %v1742_v4, %s1354_s23 }
 0x160   : > { %1174 = vperm.xlu0 %1328, %v1166_v55   ;;  %1169 = vperm.xlu1 %1329, %v1165_v59  }
 0x164   : > { %1192 = vperm.xlu0 %1328, %v1184_v56   ;;  %1187 = vperm.xlu1 %1329, %v1183_v33  }
 0x172   : > { %v911_v35 = vpop.permute.xlu0 %910  ;;  %v907_v26 = vpop.permute.xlu1 %906 }
 0x173   : > { %v913_v36 = vsel %vm608_vm6, %v907_v26, %v911_v35 }
 0x174   : > { %1013 = vmatprep.subr.mxu0 %v913_v36 }
 0x176   : > { %v905_v37 = vpop.permute.xlu0 %904  ;;  %v903_v41 = vpop.permute.xlu1 %902 }
 0x177   : > { %v915_v43 = vsel %vm608_vm6, %v903_v41, %v907_v26  ;;  %v917_v45 = vsel %vm608_vm6, %v911_v35, %v903_v41 }
 0x178   : > { %1014 = vmatpush1.msra.mxu0 %v915_v43  ;;  %1091 = vmatpush1.msra.mxu1 %v917_v45 }
 0x179   : > { %1092 = vmatprep.subr.mxu1 %v1355_v2 }
 0x17a   : > { %v901_v38 = vpop.permute.xlu0 %900  ;;  %v909_v46 = vpop.permute.xlu1 %908 }
 0x17b   : > { %v912_v58 = vsel %vm608_vm6, %v905_v37, %v909_v46  ;;  %v916_v8 = vsel %vm608_vm6, %v909_v46, %v901_v38  ;;  %v914_v49 = vsel %vm608_vm6, %v901_v38, %v905_v37 }
 0x17c   : > { %1015 = vmatprep.subr.mxu0 %v912_v58  ;;  %1093 = vmatpush1.msra.mxu1 %v916_v8 }
 0x17d   : > { %1016 = vmatpush1.msra.mxu0 %v914_v49  ;;  %1094 = vmatprep.subr.mxu1 %v1355_v2 }
 0x17e   : > { %v887_v28 = vpop.permute.xlu0 %886  ;;  %v883_v14 = vpop.permute.xlu1 %882 }
 0x17f   : > { %v889_v60 = vsel %vm566_vm5, %v883_v14, %v887_v28 }
 0x180   : > { %1017 = vmatprep.subr.mxu0 %v889_v60 }
 0x182   : > { %v881_v11 = vpop.permute.xlu0 %880  ;;  %v879_v61 = vpop.permute.xlu1 %878 }
 0x183   : > { %v891_v34 = vsel %vm566_vm5, %v879_v61, %v883_v14  ;;  %v893_v62 = vsel %vm566_vm5, %v887_v28, %v879_v61 }
 0x184   : > { %1018 = vmatpush1.msra.mxu0 %v891_v34  ;;  %1095 = vmatpush1.msra.mxu1 %v893_v62 }
 0x185   : > { %1096 = vmatprep.subr.mxu1 %v1355_v2 }
 0x186   : > { %v877_v63 = vpop.permute.xlu0 %876  ;;  %v885_v48 = vpop.permute.xlu1 %884 }
 0x187   : > { %v888_v0 = vsel %vm566_vm5, %v881_v11, %v885_v48  ;;  %v892_v17 = vsel %vm566_vm5, %v885_v48, %v877_v63  ;;  %v890_v12 = vsel %vm566_vm5, %v877_v63, %v881_v11 }
 0x188   : > { %1019 = vmatprep.subr.mxu0 %v888_v0  ;;  %1097 = vmatpush1.msra.mxu1 %v892_v17 }
 0x189   : > { %1020 = vmatpush1.msra.mxu0 %v890_v12  ;;  %1098 = vmatprep.subr.mxu1 %v1355_v2 }
 0x18a   : > { %v863_v52 = vpop.permute.xlu0 %862  ;;  %v859_v30 = vpop.permute.xlu1 %858 }
 0x18b   : > { %v865_v1 = vsel %vm524_vm4, %v859_v30, %v863_v52 }
 0x18c   : > { %1021 = vmatprep.subr.mxu0 %v865_v1 }
 0x18e   : > { %v857_v54 = vpop.permute.xlu0 %856  ;;  %v855_v32 = vpop.permute.xlu1 %854 }
 0x18f   : > { %v867_v5 = vsel %vm524_vm4, %v855_v32, %v859_v30  ;;  %v869_v13 = vsel %vm524_vm4, %v863_v52, %v855_v32 }
 0x190   : > { %1022 = vmatpush1.msra.mxu0 %v867_v5  ;;  %1099 = vmatpush1.msra.mxu1 %v869_v13 }
 0x191   : > { %1100 = vmatprep.subr.mxu1 %v1355_v2 }
 0x192   : > { %v853_v39 = vpop.permute.xlu0 %852  ;;  %v861_v40 = vpop.permute.xlu1 %860 }
 0x193   : > { %v864_v42 = vsel %vm524_vm4, %v857_v54, %v861_v40  ;;  %v868_v9 = vsel %vm524_vm4, %v861_v40, %v853_v39  ;;  %v866_v57 = vsel %vm524_vm4, %v853_v39, %v857_v54  ;;  %v948_v39 = vld [vmem:[%s1991_s5] sm:$0xff] }
 0x194   : > { %1023 = vmatprep.subr.mxu0 %v864_v42  ;;  %1101 = vmatpush1.msra.mxu1 %v868_v9 }
 0x195   : > { %1024 = vmatpush1.msra.mxu0 %v866_v57  ;;  %1102 = vmatprep.subr.mxu1 %v1355_v2  ;;  %v950_v57 = vld [vmem:[%s1991_s5 + $0x10] sm:$0xff] }
 0x196   : > { %v829_v16 = vpop.permute.xlu0 %828  ;;  %1025 = vmatprep.subr.mxu0 %v1723_v25  ;;  %1103 = vmatpush1.msra.mxu1 %v1725_v27  ;;  %v825_v18 = vpop.permute.xlu1 %824 }
 0x197   : > { %1026 = vmatpush1.msra.mxu0 %v1734_v29  ;;  %1104 = vmatprep.subr.mxu1 %v1355_v2  ;;  %v837_v19 = vsel %vm462_vm3, %v825_v18, %v829_v16 }
 0x198   : > { %1027 = vmatprep.subr.mxu0 %v1732_v10  ;;  %1105 = vmatpush1.msra.mxu1 %v1742_v4 }
 0x199   : > { %1028 = vmatpush1.msra.mxu0 %v1740_v51  ;;  %1106 = vmatprep.subr.mxu1 %v1355_v2 }
 0x19a   : > { %v823_v15 = vpop.permute.xlu0 %822  ;;  %1029 = vmatprep.subr.mxu0 %v837_v19  ;;  %v833_v44 = vpop.permute.xlu1 %832 }
 0x19b   : > { %v839_v7 = vsel %vm462_vm3, %v833_v44, %v825_v18  ;;  %v835_v20 = vsel %vm462_vm3, %v829_v16, %v833_v44 }
 0x19c   : > { %1030 = vmatpush1.msra.mxu0 %v839_v7  ;;  %1107 = vmatpush1.msra.mxu1 %v835_v20 }
 0x19d   : > { %1108 = vmatprep.subr.mxu1 %v1355_v2 }
 0x19e   : > { %v831_v21 = vpop.permute.xlu0 %830  ;;  %v827_v22 = vpop.permute.xlu1 %826 }
 0x19f   : > { %v836_v47 = vsel %vm462_vm3, %v823_v15, %v827_v22  ;;  %v834_v23 = vsel %vm462_vm3, %v827_v22, %v831_v21  ;;  %v838_v24 = vsel %vm462_vm3, %v831_v21, %v823_v15 }
 0x1a0   : > { %1031 = vmatprep.subr.mxu0 %v836_v47  ;;  %1109 = vmatpush1.msra.mxu1 %v834_v23 }
 0x1a1   : > { %1032 = vmatpush1.msra.mxu0 %v838_v24  ;;  %1110 = vmatprep.subr.mxu1 %v1355_v2 }
 0x1a2   : > { %v805_v25 = vpop.permute.xlu0 %804  ;;  %v801_v27 = vpop.permute.xlu1 %800 }
 0x1a3   : > { %v813_v53 = vsel %vm420_vm2, %v801_v27, %v805_v25 }
 0x1a4   : > { %1033 = vmatprep.subr.mxu0 %v813_v53 }
 0x1a6   : > { %v799_v3 = vpop.permute.xlu0 %798  ;;  %v809_v6 = vpop.permute.xlu1 %808 }
 0x1a7   : > { %v815_v10 = vsel %vm420_vm2, %v809_v6, %v801_v27  ;;  %v811_v29 = vsel %vm420_vm2, %v805_v25, %v809_v6 }
 0x1a8   : > { %1034 = vmatpush1.msra.mxu0 %v815_v10  ;;  %1111 = vmatpush1.msra.mxu1 %v811_v29 }
 0x1a9   : > { %1112 = vmatprep.subr.mxu1 %v1355_v2 }
 0x1aa   : > { %v807_v51 = vpop.permute.xlu0 %806  ;;  %v803_v4 = vpop.permute.xlu1 %802 }
 0x1ab   : > { %v812_v50 = vsel %vm420_vm2, %v799_v3, %v803_v4  ;;  %v810_v55 = vsel %vm420_vm2, %v803_v4, %v807_v51  ;;  %v814_v59 = vsel %vm420_vm2, %v807_v51, %v799_v3 }
 0x1ac   : > { %1035 = vmatprep.subr.mxu0 %v812_v50  ;;  %1113 = vmatpush1.msra.mxu1 %v810_v55 }
 0x1ad   : > { %1036 = vmatpush1.msra.mxu0 %v814_v59  ;;  %1114 = vmatprep.subr.mxu1 %v1355_v2 }
 0x1ae   : > { %v781_v56 = vpop.permute.xlu0 %780  ;;  %v777_v33 = vpop.permute.xlu1 %776 }
 0x1af   : > { %v789_v35 = vsel %vm378_vm0, %v777_v33, %v781_v56 }
 0x1b0   : > { %1037 = vmatprep.subr.mxu0 %v789_v35 }
 0x1b2   : > { %v775_v26 = vpop.permute.xlu0 %774  ;;  %v785_v36 = vpop.permute.xlu1 %784 }
 0x1b3   : > { %v791_v37 = vsel %vm378_vm0, %v785_v36, %v777_v33  ;;  %v787_v41 = vsel %vm378_vm0, %v781_v56, %v785_v36 }
 0x1b4   : > { %1038 = vmatpush1.msra.mxu0 %v791_v37  ;;  %1115 = vmatpush1.msra.mxu1 %v787_v41 }
 0x1b5   : > { %1116 = vmatprep.subr.mxu1 %v1355_v2 }
 0x1b6   : > { %v783_v43 = vpop.permute.xlu0 %782  ;;  %v779_v45 = vpop.permute.xlu1 %778 }
 0x1b7   : > { %v788_v38 = vsel %vm378_vm0, %v775_v26, %v779_v45  ;;  %v786_v46 = vsel %vm378_vm0, %v779_v45, %v783_v43  ;;  %v790_v58 = vsel %vm378_vm0, %v783_v43, %v775_v26 }
 0x1b8   : > { %1039 = vmatprep.subr.mxu0 %v788_v38  ;;  %1117 = vmatpush1.msra.mxu1 %v786_v46 }
 0x1b9   : > { %1040 = vmatpush1.msra.mxu0 %v790_v58  ;;  %1118 = vmatprep.subr.mxu1 %v1355_v2 }
 0x1ba   : > { %v757_v8 = vpop.permute.xlu0 %756  ;;  %v753_v49 = vpop.permute.xlu1 %752 }
 0x1bb   : > { %v765_v28 = vsel %vm334_vm1, %v753_v49, %v757_v8 }
 0x1bc   : > { %1041 = vmatprep.subr.mxu0 %v765_v28 }
 0x1be   : > { %v751_v14 = vpop.permute.xlu0 %750  ;;  %v761_v60 = vpop.permute.xlu1 %760 }
 0x1bf   : > { %v767_v11 = vsel %vm334_vm1, %v761_v60, %v753_v49  ;;  %v763_v61 = vsel %vm334_vm1, %v757_v8, %v761_v60 }
 0x1c0   : > { %1042 = vmatpush1.msra.mxu0 %v767_v11  ;;  %1119 = vmatpush1.msra.mxu1 %v763_v61 }
 0x1c1   : > { %1120 = vmatprep.subr.mxu1 %v1355_v2 }
 0x1c2   : > { %v759_v34 = vpop.permute.xlu0 %758  ;;  %v755_v62 = vpop.permute.xlu1 %754 }
 0x1c3   : > { %v764_v63 = vsel %vm334_vm1, %v751_v14, %v755_v62  ;;  %v762_v48 = vsel %vm334_vm1, %v755_v62, %v759_v34  ;;  %v766_v0 = vsel %vm334_vm1, %v759_v34, %v751_v14 }
 0x1c4   : > { %1043 = vmatprep.subr.mxu0 %v764_v63  ;;  %1121 = vmatpush1.msra.mxu1 %v762_v48 }
 0x1c5   : > { %1044 = vmatpush1.msra.mxu0 %v766_v0  ;;  %1150 = vmatprep.subr.mxu1 %v1355_v2 }
 0x1c6   : > { %v935_v17 = vpop.permute.xlu0 %934  ;;  %v931_v12 = vpop.permute.xlu1 %930 }
 0x1c7   : > { %v937_v52 = vsel %vm650_vm7, %v931_v12, %v935_v17 }
 0x1c8   : > { %1073 = vmatprep.subr.mxu0 %v937_v52 }
 0x1ca   : > { %v929_v30 = vpop.permute.xlu0 %928  ;;  %v927_v1 = vpop.permute.xlu1 %926 }
 0x1cb   : > { %v939_v54 = vsel %vm650_vm7, %v927_v1, %v931_v12  ;;  %v941_v32 = vsel %vm650_vm7, %v935_v17, %v927_v1 }
 0x1cc   : > { %1074 = vmatpush2.msra.mxu0 %v939_v54  ;;  %1151 = vmatpush2.msra.mxu1 %v941_v32 }
 0x1cd   : > { %1152 = vmatprep.subr.mxu1 %v1355_v2  ;;  %v951_v2 = vld [vmem:[%s1991_s5 + $0x18] sm:$0xff] }
 0x1ce   : > { %v925_v5 = vpop.permute.xlu0 %924  ;;  %v933_v13 = vpop.permute.xlu1 %932 }
 0x1cf   : > { %v936_v40 = vsel %vm650_vm7, %v929_v30, %v933_v13  ;;  %v940_v42 = vsel %vm650_vm7, %v933_v13, %v925_v5  ;;  %v938_v9 = vsel %vm650_vm7, %v925_v5, %v929_v30 }
 0x1d0   : > { %1075 = vmatprep.subr.mxu0 %v936_v40  ;;  %1153 = vmatpush2.msra.mxu1 %v940_v42 }
 0x1d1   : > { %1076 = vmatpush2.msra.mxu0 %v938_v9  ;;  %1155 = vmatmul.mubr.f32.vlgmr.msra.gmra.mxu1 %v948_v39 }
 0x1d2   : > { %1078 = vmatmul.mubr.f32.vlgmr.msra.gmra.mxu0 %v948_v39  ;;  %1281 = vmatprep.mubr.msk.f32.mxu1 %vm1006_vm8, %v951_v2 }
 0x1d3   : > { %1279 = vmatprep.mubr.msk.f32.mxu0 %vm1006_vm8, %v951_v2 }
 0x1d5   : > { %1160 = vmatmul.mubr.f32.gmra.mxu1 %v950_v57 }
 0x1d6   : > { %1084 = vmatmul.mubr.f32.gmra.mxu0 %v950_v57 }
 0x1db   : > { %v1170_v31 = vpop.permute.xlu1 %1169  ;;  %v1175_v16 = vpop.permute.xlu0 %1174 }
 0x1df   : > { %v1188_v44 = vpop.permute.xlu1 %1187  ;;  %v1193_v3 = vpop.permute.xlu0 %1192 }
 0x291   : > { %v1156_v18 = vpop.f32.mrf.mxu1 }
 0x292   : > { %v1179_v19 = vmul.f32 %v1170_v31, %v1156_v18  ;;  %v1079_v15 = vpop.f32.mrf.mxu0 }
 0x293   : > { %v1177_v7 = vmul.f32 %v1170_v31, %v1079_v15  ;;  %v1158_v20 = vpop.f32.mrf.mxu1 }
 0x294   : > { %v1197_v21 = vadd.f32 %v1188_v44, %v1179_v19  ;;  %v1081_v22 = vpop.f32.mrf.mxu0 }
 0x295   : > { %v1195_v47 = vadd.f32 %v1188_v44, %v1177_v7  ;;  %v1178_v23 = vmul.f32 %v1170_v31, %v1081_v22  ;;  %v1161_v24 = vpop.f32.mrf.mxu1 }
 0x296   : > { %v1203_v25 = vmax.f32 %v1197_v21, 0.0  ;;  %v1182_v27 = vmul.f32 %v1175_v16, %v1161_v24  ;;  %v1085_v53 = vpop.f32.mrf.mxu0 }
 0x297   : > { %v1201_v6 = vmax.f32 %v1195_v47, 0.0  ;;  %v1196_v10 = vadd.f32 %v1188_v44, %v1178_v23  ;;  %v1180_v29 = vmul.f32 %v1175_v16, %v1085_v53  ;;  %v1163_v51 = vpop.f32.mrf.mxu1 }
 0x298   : > { %1209 = vst [vmem:[%s304_s14 + $0x10] sm:$0xff] %v1203_v25  ;;  %v1200_v4 = vadd.f32 %v1193_v3, %v1182_v27  ;;  %v1087_v50 = vpop.f32.mrf.mxu0 }
 0x299   : > { %1207 = vst [vmem:[%s304_s14] sm:$0xff] %v1201_v6  ;;  %v1202_v55 = vmax.f32 %v1196_v10, 0.0  ;;  %v1198_v59 = vadd.f32 %v1193_v3, %v1180_v29  ;;  %v1181_v56 = vmul.f32 %v1175_v16, %v1087_v50 }
 0x29a   : > { %v1206_v33 = vmax.f32 %v1200_v4, 0.0 }
 0x29b   : > { %1208 = vst [vmem:[%s304_s14 + $0x8] sm:$0xff] %v1202_v55  ;;  %v1204_v35 = vmax.f32 %v1198_v59, 0.0  ;;  %v1199_v26 = vadd.f32 %v1193_v3, %v1181_v56 }
 0x29c   : > { %1212 = vst [vmem:[%s304_s14 + $0x28] sm:$0xff] %v1206_v33 }
 0x29d   : > { %1210 = vst [vmem:[%s304_s14 + $0x18] sm:$0xff] %v1204_v35  ;;  %v1205_v36 = vmax.f32 %v1199_v26, 0.0 }
 0x29f   : > { %1211 = vst [vmem:[%s304_s14 + $0x20] sm:$0xff] %v1205_v36 }
 0x2a0 PF: > { %s18_s27 = sadd.s32 1, %s1336_s27  }
 0x2a1   : > { %p15_p5 = scmp.ge.s32.totalorder %s18_s27, 4  }
 0x2a3   :  { %17 = sbr.rel (!%p15_p5) target bundleno = 1 (0x1), region = 82 }

</bundles_post_ra>
